<compile_context>
chip_gen: v7x
topology: tpu7x:2x2x1
jax: 0.10.0
libtpu: 0.0.40
codegen_flags: <defaults>
</compile_context>

<pallas_src>
import jax
import jax.numpy as jnp
from jax.experimental import pallas as pl
from jax.experimental.pallas import tpu as pltpu


def _round_up(x, m):
    return ((x + m - 1) // m) * m


# ----------------------------------------------------------------------------
# Plain-JAX neighborhood search (FPS + ball query).  Inherently sequential /
# sort-based; only their (small) integer outputs feed the fused Pallas kernel.
# ----------------------------------------------------------------------------
def square_distance(src, dst):
    # src [B,S,3], dst [B,N,3] -> [B,S,N]
    return jnp.sum((src[:, :, None, :] - dst[:, None, :, :]) ** 2, axis=-1)


def farthest_point_sample(xyz, npoint):
    # Deterministic start at index 0 (matches the CUDA reference semantics).
    B, N, _ = xyz.shape

    def body(i, state):
        centroids, distance, farthest = state
        centroids = centroids.at[:, i].set(farthest)
        centroid = xyz[jnp.arange(B), farthest][:, None, :]          # [B,1,3]
        dist = jnp.sum((xyz - centroid) ** 2, axis=-1)               # [B,N]
        distance = jnp.minimum(distance, dist)
        farthest = jnp.argmax(distance, axis=-1).astype(jnp.int32)
        return centroids, distance, farthest

    centroids = jnp.zeros((B, npoint), jnp.int32)
    distance = jnp.full((B, N), 1e10, jnp.float32)
    farthest = jnp.zeros((B,), jnp.int32)
    centroids, _, _ = jax.lax.fori_loop(0, npoint, body,
                                        (centroids, distance, farthest))
    return centroids


def ball_query(radius, nsample, xyz, new_xyz):
    B, N, _ = xyz.shape
    S = new_xyz.shape[1]
    sqrdists = square_distance(new_xyz, xyz)                         # [B,S,N]
    group_idx = jnp.broadcast_to(jnp.arange(N, dtype=jnp.int32), (B, S, N))
    group_idx = jnp.where(sqrdists > radius ** 2, N, group_idx)
    group_idx = jnp.sort(group_idx, axis=-1)[:, :, :nsample]
    group_first = jnp.broadcast_to(group_idx[:, :, :1], group_idx.shape)
    group_idx = jnp.where(group_idx == N, group_first, group_idx)
    return group_idx.astype(jnp.int32)


def index_points(points, idx):
    # points [B,N,C], idx [B,...] -> [B,...,C]   (used for new_xyz + reference)
    B, _, C = points.shape
    flat_idx = idx.reshape(B, -1)
    gather_idx = jnp.broadcast_to(flat_idx[..., None],
                                  (B, flat_idx.shape[1], C))
    gathered = jnp.take_along_axis(points, gather_idx, axis=1)
    return gathered.reshape(idx.shape + (C,))


# ----------------------------------------------------------------------------
# Fused Pallas kernel: one-hot MXU gather + pointwise MLP + max over neighbors.
# One grid step = one batch element x one tile of tS centroids.
# ----------------------------------------------------------------------------
def _make_fused_kernel(n_layers, tile_s, n_sample, c_in, c_out_p):
    def kernel(idx_ref, nxyz_ref, feats_ref, *refs):
        w_refs = refs[0:2 * n_layers:2]
        b_refs = refs[1:2 * n_layers:2]
        o_ref = refs[2 * n_layers]

        idx_v = idx_ref[0]                                    # (tS, K)  int32
        nxyz = nxyz_ref[0]                                    # (tS, 3)  f32
        feats = feats_ref[0]                                  # (N_pad, C_in) bf16
        n_pad = feats.shape[0]

        # Centroid, zero-extended over the point-feature channels so the
        # xyz-norm subtraction only touches the first 3 input channels.
        if c_in > 3:
            c_ext = jnp.concatenate(
                [nxyz, jnp.zeros((tile_s, c_in - 3), jnp.float32)], axis=1)
        else:
            c_ext = nxyz

        # Hoisted: iota and resident weights/biases (no per-k re-broadcast).
        point_ids = jax.lax.broadcasted_iota(jnp.int32, (tile_s, n_pad), 1)
        w_vals = [w_refs[i][...] for i in range(n_layers)]    # bf16
        b_vals = [b_refs[i][...] for i in range(n_layers)]    # f32

        # Running max over neighbors; ReLU outputs are >= 0, so 0-init is exact.
        running = jnp.zeros((tile_s, c_out_p), jnp.float32)
        for k in range(n_sample):                             # static unroll
            # One-hot gather on the MXU: rows of `feats` selected by idx[:, k].
            onehot = (point_ids == idx_v[:, k:k + 1]).astype(jnp.bfloat16)
            g = jnp.dot(onehot, feats, preferred_element_type=jnp.float32)
            x = g - c_ext                                     # xyz-norm (f32)
            for i in range(n_layers):
                acc = jnp.dot(x.astype(jnp.bfloat16), w_vals[i],
                              preferred_element_type=jnp.float32)
                x = jnp.maximum(acc + b_vals[i], 0.0)         # folded BN + ReLU
            running = jnp.maximum(running, x)
        o_ref[0] = running

    return kernel


def _pick_vmem_limit_bytes():
    cap = None
    try:
        info = pltpu.get_tpu_info()
        cap = int(getattr(info, "vmem_capacity_bytes", 0)) or None
    except Exception:
        cap = None
    if cap is None:
        cap = 64 * 1024 * 1024            # conservative default (v7x per-TC)
    # v5e/v6e (128 MiB) -> 64 MiB scoped; v7x (64 MiB) -> 32 MiB scoped.
    return int(min(max(cap // 2, 32 * 1024 * 1024), 64 * 1024 * 1024))


def _choose_tile_s(S, B, K, C_in, N_pad, layer_widths, c_out_p, vmem_limit):
    """Largest multiple-of-8 S tile whose VMEM working set — with real
    (sublane, lane) tile padding — fits in ~70% of the scoped VMEM limit."""
    def f32_tile(r, c):
        return _round_up(max(r, 1), 8) * _round_up(max(c, 1), 128) * 4

    def bf16_tile(r, c):
        return _round_up(max(r, 1), 16) * _round_up(max(c, 1), 128) * 2

    budget = int(vmem_limit * 0.7)
    # Grid-invariant / per-batch blocks (double-buffered by the pipeliner).
    fixed = 2 * bf16_tile(N_pad, C_in)                        # point table
    last = C_in
    for w in layer_widths:
        fixed += 2 * bf16_tile(last, w)                       # weights
        fixed += 2 * f32_tile(1, w)                           # biases
        last = w
    widest = max([C_in] + list(layer_widths) + [c_out_p])
    # Per-centroid-row bytes: streamed blocks (x2 buffers) + live intermediates.
    per_row = (2 * _round_up(K, 128) * 4                      # idx block (i32)
               + 2 * 128 * 4                                  # new_xyz block
               + 2 * _round_up(c_out_p, 128) * 4              # output block
               + 2 * _round_up(N_pad, 128) * 2                # live one-hot bf16
               + 4 * _round_up(widest, 128) * 4               # live f32 acts
               + 2 * _round_up(widest, 128) * 2)              # bf16 act copies
    tile = (budget - fixed) // max(per_row, 1)
    tile = max(8, min(512, (tile // 8) * 8))
    s_aligned = _round_up(S, 8)
    tile = min(tile, s_aligned)
    if B == 1:
        # v7x megacore: make sure both TensorCores get at least one S tile.
        half = max(8, _round_up((s_aligned + 1) // 2, 8))
        tile = min(tile, half)
    return int(tile)


def pointnet_sa_mlp_max(feats, idx, new_xyz, fused_ws, fused_bs):
    """Fused gather + pointwise MLP (1x1 conv + folded BN + ReLU) + max-over-K.

    feats   [B, N, 3+D] f32    per-point features (xyz concat point features)
    idx     [B, S, K]   int32  ball-query neighbor indices into N
    new_xyz [B, S, 3]   f32    sampled centroids
    returns [B, S, C_out] f32
    """
    B, N, C_in = feats.shape
    _, S, K = idx.shape
    n_layers = len(fused_ws)
    C_out = fused_ws[-1].shape[1]
    layer_widths = [w.shape[1] for w in fused_ws]

    # Lane-dense output only when the head is wide enough to make it (near) free.
    C_out_p = _round_up(C_out, 128) if C_out >= 64 else C_out

    ws, bs = [], []
    for i, (w, b) in enumerate(zip(fused_ws, fused_bs)):
        if i == n_layers - 1 and C_out_p != C_out:
            w = jnp.pad(w, ((0, 0), (0, C_out_p - C_out)))    # zero cols
            b = jnp.pad(b, ((0, 0), (0, C_out_p - C_out)))
        ws.append(w.astype(jnp.bfloat16))
        bs.append(b.astype(jnp.float32))
    layer_widths[-1] = C_out_p

    # Per-batch point table: pad N (zero rows are never selected: idx < N) and
    # cast to bf16 once.  Small tensor; no K-fold replication, no big HBM passes.
    N_pad = _round_up(N, 128)
    feats_p = jnp.pad(feats, ((0, 0), (0, N_pad - N), (0, 0))).astype(jnp.bfloat16)

    vmem_limit = _pick_vmem_limit_bytes()
    tS = _choose_tile_s(S, B, K, C_in, N_pad, layer_widths, C_out_p, vmem_limit)
    S_pad = _round_up(S, tS)
    idx_p = jnp.pad(idx.astype(jnp.int32), ((0, 0), (0, S_pad - S), (0, 0)))
    nxyz_p = jnp.pad(new_xyz.astype(jnp.float32),
                     ((0, 0), (0, S_pad - S), (0, 0)))

    in_specs = [
        pl.BlockSpec((1, tS, K), lambda b, s: (b, s, 0)),         # idx
        pl.BlockSpec((1, tS, 3), lambda b, s: (b, s, 0)),         # new_xyz
        pl.BlockSpec((1, N_pad, C_in), lambda b, s: (b, 0, 0)),   # point table
    ]
    operands = [idx_p, nxyz_p, feats_p]
    for w, bias in zip(ws, bs):
        # Constant index map -> fetched once, resident across the whole grid.
        # TODO(synk): single-buffer these via pipeline_mode=pl.Buffered(1) once
        # verified on the deployed jax version (saves VMEM for deep SA layers).
        in_specs.append(pl.BlockSpec(w.shape, lambda b, s: (0, 0)))
        in_specs.append(pl.BlockSpec(bias.shape, lambda b, s: (0, 0)))
        operands.append(w)
        operands.append(bias)

    grid = (B, S_pad // tS)

    mlp_flops = 0
    last = C_in
    for cw in layer_widths:
        mlp_flops += 2 * last * cw
        last = cw
    flops = B * S_pad * K * (2 * N_pad * C_in + mlp_flops)
    bytes_accessed = (int(idx_p.size) * 4 + int(nxyz_p.size) * 4
                      + int(feats_p.size) * 2
                      + sum(int(w.size) * 2 + int(b.size) * 4
                            for w, b in zip(ws, bs))
                      + B * S_pad * C_out_p * 4)

    # TODO(synk): for very large N (point table >> VMEM), switch the in-kernel
    # one-hot gather to a manual make_async_copy DMA gather over a pl.ANY
    # (HBM-resident) point table with scalar-prefetched indices.
    out = pl.pallas_call(
        _make_fused_kernel(n_layers, tS, K, C_in, C_out_p),
        out_shape=jax.ShapeDtypeStruct((B, S_pad, C_out_p), jnp.float32),
        grid=grid,
        in_specs=in_specs,
        out_specs=pl.BlockSpec((1, tS, C_out_p), lambda b, s: (b, s, 0)),
        compiler_params=pltpu.CompilerParams(
            dimension_semantics=("parallel", "parallel"),
            vmem_limit_bytes=vmem_limit),
        cost_estimate=pl.CostEstimate(flops=int(flops), transcendentals=0,
                                      bytes_accessed=int(bytes_accessed)),
    )(*operands)

    return out[:, :S, :C_out]


# ----------------------------------------------------------------------------
# Module-level forward, parameter setup (deterministic) and BN folding.
# ----------------------------------------------------------------------------
def pointnet_set_abstraction(xyz, points, npoint, radius, nsample,
                             fused_ws, fused_bs):
    """xyz [B,N,3], points [B,N,D] -> new_xyz [B,S,3], new_feat [B,S,mlp[-1]]"""
    fps_idx = farthest_point_sample(xyz, npoint)
    new_xyz = index_points(xyz, fps_idx)                          # [B,S,3]
    idx = ball_query(radius, nsample, xyz, new_xyz)               # [B,S,K]
    feats = (jnp.concatenate([xyz, points], axis=-1)
             if points is not None else xyz)                      # [B,N,3+D]
    new_feat = pointnet_sa_mlp_max(feats, idx, new_xyz, fused_ws, fused_bs)
    return new_xyz, new_feat


def sample_and_group(npoint, radius, nsample, xyz, points):
    """Reference-path grouping that materializes [B,S,K,3+D]; used only for the
    pure-JAX correctness check (the fused forward never builds this tensor)."""
    fps_idx = farthest_point_sample(xyz, npoint)
    new_xyz = index_points(xyz, fps_idx)
    idx = ball_query(radius, nsample, xyz, new_xyz)
    grouped_xyz = index_points(xyz, idx)
    grouped_xyz_norm = grouped_xyz - new_xyz[:, :, None, :]
    grouped_points = index_points(points, idx)
    new_points = jnp.concatenate([grouped_xyz_norm, grouped_points], axis=-1)
    return new_xyz, new_points


def init_params(key, in_channel, mlp):
    params = []
    last = in_channel
    for out in mlp:
        key, k1, k2, k3, k4, k5, k6 = jax.random.split(key, 7)
        bound = 1.0 / (last ** 0.5)
        w = jax.random.uniform(k1, (out, last), jnp.float32, -bound, bound)
        b = jax.random.uniform(k2, (out,), jnp.float32, -bound, bound)
        gamma = 1.0 + 0.1 * jax.random.normal(k3, (out,), jnp.float32)
        beta = 0.05 * jax.random.normal(k4, (out,), jnp.float32)
        mean = 0.1 * jax.random.normal(k5, (out,), jnp.float32)
        var = 1.0 + 0.1 * jax.random.uniform(k6, (out,), jnp.float32)
        params.append((w, b, gamma, beta, mean, var))
        last = out
    return params


def fuse_params(params, eps=1e-5):
    # relu(bn(conv(x))) = relu(x @ W_f + b_f)   (inference-mode BN fold)
    ws, bs = [], []
    for (w, b, gamma, beta, mean, var) in params:
        scale = gamma / jnp.sqrt(var + eps)
        w_f = w.T * scale[None, :]                       # [C_in, C_out]
        b_f = (b - mean) * scale + beta                  # [C_out]
        ws.append(w_f.astype(jnp.float32))
        bs.append(b_f.reshape(1, -1).astype(jnp.float32))
    return ws, bs


def mlp_max_reference(new_points, fused_ws, fused_bs):
    # Pure-JAX f32 reference of the fused gather+MLP+max (correctness check).
    x = new_points.astype(jnp.float32)
    for w, b in zip(fused_ws, fused_bs):
        x = jnp.maximum(jnp.einsum('bskc,cd->bskd', x, w) + b, 0.0)
    return jnp.max(x, axis=2)


if __name__ == "__main__":
    B, N, D = 2, 16, 4
    npoint, radius, nsample = 8, 0.4, 8
    in_channel = 3 + D                # grouped xyz_norm (3) + point features (D)
    mlp = [16, 32]

    key = jax.random.PRNGKey(0)
    kx, kp, kw = jax.random.split(key, 3)
    xyz = jax.random.uniform(kx, (B, N, 3), jnp.float32)
    points = jax.random.normal(kp, (B, N, D), jnp.float32)

    params = init_params(kw, in_channel, mlp)
    fused_ws, fused_bs = fuse_params(params)

    new_xyz, new_feat = pointnet_set_abstraction(
        xyz, points, npoint, radius, nsample, fused_ws, fused_bs)
    jax.block_until_ready((new_xyz, new_feat))

    assert new_xyz.shape == (B, npoint, 3)
    assert new_feat.shape == (B, npoint, mlp[-1])

    # Correctness check vs. pure-JAX f32 reference (bf16 matmuls, f32 accum).
    _, new_points = sample_and_group(npoint, radius, nsample, xyz, points)
    ref = mlp_max_reference(new_points, fused_ws, fused_bs)
    assert jnp.allclose(new_feat, ref, rtol=5e-2, atol=5e-2)

    print("KERNEL_OK")
</pallas_src>

<mosaic_0001>
module attributes {stable_mosaic.version = 11 : i64} {
  func.func @kernel(%arg0: i32, %arg1: i32, %arg2: memref<1x8x8xi32, #tpu.memory_space<vmem>>, %arg3: memref<1x8x3xf32, #tpu.memory_space<vmem>>, %arg4: memref<1x128x7xbf16, #tpu.memory_space<vmem>>, %arg5: memref<7x16xbf16, #tpu.memory_space<vmem>>, %arg6: memref<1x16xf32, #tpu.memory_space<vmem>>, %arg7: memref<16x32xbf16, #tpu.memory_space<vmem>>, %arg8: memref<1x32xf32, #tpu.memory_space<vmem>>, %arg9: memref<1x8x32xf32, #tpu.memory_space<vmem>>) attributes {dimension_semantics = [#tpu.dimension_semantics<parallel>, #tpu.dimension_semantics<parallel>], iteration_bounds = array<i64: 2, 1>, scalar_prefetch = 0 : i64, scratch_operands = 0 : i64, tpu.core_type = #tpu.core_type<tc>, window_params = [{transform_indices = @transform_0, window_bounds = array<i64: 1, 8, 8>}, {transform_indices = @transform_1, window_bounds = array<i64: 1, 8, 3>}, {transform_indices = @transform_2, window_bounds = array<i64: 1, 128, 7>}, {pipeline_mode = #tpu.pipeline_mode<synchronous>, transform_indices = @transform_3, window_bounds = array<i64: 7, 16>}, {pipeline_mode = #tpu.pipeline_mode<synchronous>, transform_indices = @transform_4, window_bounds = array<i64: 1, 16>}, {pipeline_mode = #tpu.pipeline_mode<synchronous>, transform_indices = @transform_5, window_bounds = array<i64: 16, 32>}, {pipeline_mode = #tpu.pipeline_mode<synchronous>, transform_indices = @transform_6, window_bounds = array<i64: 1, 32>}, {transform_indices = @transform_7, window_bounds = array<i64: 1, 8, 32>}]} {
    %c0 = arith.constant 0 : index
    %c0_0 = arith.constant 0 : index
    %c0_1 = arith.constant 0 : index
    %0 = vector.load %arg2[%c0, %c0_0, %c0_1] : memref<1x8x8xi32, #tpu.memory_space<vmem>>, vector<1x8x8xi32>
    %1 = vector.shape_cast %0 : vector<1x8x8xi32> to vector<8x8xi32>
    %c0_2 = arith.constant 0 : index
    %c0_3 = arith.constant 0 : index
    %c0_4 = arith.constant 0 : index
    %2 = vector.load %arg3[%c0_2, %c0_3, %c0_4] : memref<1x8x3xf32, #tpu.memory_space<vmem>>, vector<1x8x3xf32>
    %3 = vector.shape_cast %2 : vector<1x8x3xf32> to vector<8x3xf32>
    %c0_5 = arith.constant 0 : index
    %c0_6 = arith.constant 0 : index
    %c0_7 = arith.constant 0 : index
    %4 = vector.load %arg4[%c0_5, %c0_6, %c0_7] : memref<1x128x7xbf16, #tpu.memory_space<vmem>>, vector<1x128x7xbf16>
    %5 = vector.shape_cast %4 : vector<1x128x7xbf16> to vector<128x7xbf16>
    %cst = arith.constant 0.000000e+00 : f32
    %6 = vector.broadcast %cst : f32 to vector<8x4xf32>
    %7 = tpu.concatenate %3, %6 in 1 : vector<8x3xf32>, vector<8x4xf32> -> vector<8x7xf32>
    %8 = tpu.iota {dimensions = array<i32: 1>} : vector<8x128xi32>
    %c0_8 = arith.constant 0 : index
    %c0_9 = arith.constant 0 : index
    %9 = vector.load %arg5[%c0_8, %c0_9] : memref<7x16xbf16, #tpu.memory_space<vmem>>, vector<7x16xbf16>
    %c0_10 = arith.constant 0 : index
    %c0_11 = arith.constant 0 : index
    %10 = vector.load %arg7[%c0_10, %c0_11] : memref<16x32xbf16, #tpu.memory_space<vmem>>, vector<16x32xbf16>
    %c0_12 = arith.constant 0 : index
    %c0_13 = arith.constant 0 : index
    %11 = vector.load %arg6[%c0_12, %c0_13] : memref<1x16xf32, #tpu.memory_space<vmem>>, vector<1x16xf32>
    %c0_14 = arith.constant 0 : index
    %c0_15 = arith.constant 0 : index
    %12 = vector.load %arg8[%c0_14, %c0_15] : memref<1x32xf32, #tpu.memory_space<vmem>>, vector<1x32xf32>
    %cst_16 = arith.constant 0.000000e+00 : f32
    %13 = vector.broadcast %cst_16 : f32 to vector<8x32xf32>
    %14 = vector.extract_strided_slice %1 {offsets = [0, 0], sizes = [8, 1], strides = [1, 1]} : vector<8x8xi32> to vector<8x1xi32>
    %15 = vector.broadcast %14 : vector<8x1xi32> to vector<8x128xi32>
    %16 = arith.cmpi eq, %8, %15 : vector<8x128xi32>
    %17 = arith.extui %16 : vector<8x128xi1> to vector<8x128xi32>
    %18 = arith.sitofp %17 : vector<8x128xi32> to vector<8x128xf32>
    %19 = arith.truncf %18 : vector<8x128xf32> to vector<8x128xbf16>
    %cst_17 = arith.constant dense<0.000000e+00> : vector<8x7xf32>
    %20 = tpu.matmul %19, %5, %cst_17 {dimension_numbers = #tpu.dot_dimension_numbers<[1], [0], [0], [1], [0, 0, 1, 1], [], []>} : vector<8x128xbf16>, vector<128x7xbf16>, vector<8x7xf32> -> vector<8x7xf32>
    %21 = arith.subf %20, %7 : vector<8x7xf32>
    %22 = arith.truncf %21 : vector<8x7xf32> to vector<8x7xbf16>
    %cst_18 = arith.constant dense<0.000000e+00> : vector<8x16xf32>
    %23 = tpu.matmul %22, %9, %cst_18 {dimension_numbers = #tpu.dot_dimension_numbers<[1], [0], [0], [1], [0, 0, 1, 1], [], []>} : vector<8x7xbf16>, vector<7x16xbf16>, vector<8x16xf32> -> vector<8x16xf32>
    %24 = vector.broadcast %11 : vector<1x16xf32> to vector<8x16xf32>
    %25 = arith.addf %23, %24 : vector<8x16xf32>
    %cst_19 = arith.constant 0.000000e+00 : f32
    %26 = vector.broadcast %cst_19 : f32 to vector<8x16xf32>
    %27 = arith.maximumf %25, %26 : vector<8x16xf32>
    %28 = arith.truncf %27 : vector<8x16xf32> to vector<8x16xbf16>
    %cst_20 = arith.constant dense<0.000000e+00> : vector<8x32xf32>
    %29 = tpu.matmul %28, %10, %cst_20 {dimension_numbers = #tpu.dot_dimension_numbers<[1], [0], [0], [1], [0, 0, 1, 1], [], []>} : vector<8x16xbf16>, vector<16x32xbf16>, vector<8x32xf32> -> vector<8x32xf32>
    %30 = vector.broadcast %12 : vector<1x32xf32> to vector<8x32xf32>
    %31 = arith.addf %29, %30 : vector<8x32xf32>
    %cst_21 = arith.constant 0.000000e+00 : f32
    %32 = vector.broadcast %cst_21 : f32 to vector<8x32xf32>
    %33 = arith.maximumf %31, %32 : vector<8x32xf32>
    %34 = arith.maximumf %13, %33 : vector<8x32xf32>
    %35 = vector.extract_strided_slice %1 {offsets = [0, 1], sizes = [8, 1], strides = [1, 1]} : vector<8x8xi32> to vector<8x1xi32>
    %36 = vector.broadcast %35 : vector<8x1xi32> to vector<8x128xi32>
    %37 = arith.cmpi eq, %8, %36 : vector<8x128xi32>
    %38 = arith.extui %37 : vector<8x128xi1> to vector<8x128xi32>
    %39 = arith.sitofp %38 : vector<8x128xi32> to vector<8x128xf32>
    %40 = arith.truncf %39 : vector<8x128xf32> to vector<8x128xbf16>
    %cst_22 = arith.constant dense<0.000000e+00> : vector<8x7xf32>
    %41 = tpu.matmul %40, %5, %cst_22 {dimension_numbers = #tpu.dot_dimension_numbers<[1], [0], [0], [1], [0, 0, 1, 1], [], []>} : vector<8x128xbf16>, vector<128x7xbf16>, vector<8x7xf32> -> vector<8x7xf32>
    %42 = arith.subf %41, %7 : vector<8x7xf32>
    %43 = arith.truncf %42 : vector<8x7xf32> to vector<8x7xbf16>
    %cst_23 = arith.constant dense<0.000000e+00> : vector<8x16xf32>
    %44 = tpu.matmul %43, %9, %cst_23 {dimension_numbers = #tpu.dot_dimension_numbers<[1], [0], [0], [1], [0, 0, 1, 1], [], []>} : vector<8x7xbf16>, vector<7x16xbf16>, vector<8x16xf32> -> vector<8x16xf32>
    %45 = vector.broadcast %11 : vector<1x16xf32> to vector<8x16xf32>
    %46 = arith.addf %44, %45 : vector<8x16xf32>
    %cst_24 = arith.constant 0.000000e+00 : f32
    %47 = vector.broadcast %cst_24 : f32 to vector<8x16xf32>
    %48 = arith.maximumf %46, %47 : vector<8x16xf32>
    %49 = arith.truncf %48 : vector<8x16xf32> to vector<8x16xbf16>
    %cst_25 = arith.constant dense<0.000000e+00> : vector<8x32xf32>
    %50 = tpu.matmul %49, %10, %cst_25 {dimension_numbers = #tpu.dot_dimension_numbers<[1], [0], [0], [1], [0, 0, 1, 1], [], []>} : vector<8x16xbf16>, vector<16x32xbf16>, vector<8x32xf32> -> vector<8x32xf32>
    %51 = vector.broadcast %12 : vector<1x32xf32> to vector<8x32xf32>
    %52 = arith.addf %50, %51 : vector<8x32xf32>
    %cst_26 = arith.constant 0.000000e+00 : f32
    %53 = vector.broadcast %cst_26 : f32 to vector<8x32xf32>
    %54 = arith.maximumf %52, %53 : vector<8x32xf32>
    %55 = arith.maximumf %34, %54 : vector<8x32xf32>
    %56 = vector.extract_strided_slice %1 {offsets = [0, 2], sizes = [8, 1], strides = [1, 1]} : vector<8x8xi32> to vector<8x1xi32>
    %57 = vector.broadcast %56 : vector<8x1xi32> to vector<8x128xi32>
    %58 = arith.cmpi eq, %8, %57 : vector<8x128xi32>
    %59 = arith.extui %58 : vector<8x128xi1> to vector<8x128xi32>
    %60 = arith.sitofp %59 : vector<8x128xi32> to vector<8x128xf32>
    %61 = arith.truncf %60 : vector<8x128xf32> to vector<8x128xbf16>
    %cst_27 = arith.constant dense<0.000000e+00> : vector<8x7xf32>
    %62 = tpu.matmul %61, %5, %cst_27 {dimension_numbers = #tpu.dot_dimension_numbers<[1], [0], [0], [1], [0, 0, 1, 1], [], []>} : vector<8x128xbf16>, vector<128x7xbf16>, vector<8x7xf32> -> vector<8x7xf32>
    %63 = arith.subf %62, %7 : vector<8x7xf32>
    %64 = arith.truncf %63 : vector<8x7xf32> to vector<8x7xbf16>
    %cst_28 = arith.constant dense<0.000000e+00> : vector<8x16xf32>
    %65 = tpu.matmul %64, %9, %cst_28 {dimension_numbers = #tpu.dot_dimension_numbers<[1], [0], [0], [1], [0, 0, 1, 1], [], []>} : vector<8x7xbf16>, vector<7x16xbf16>, vector<8x16xf32> -> vector<8x16xf32>
    %66 = vector.broadcast %11 : vector<1x16xf32> to vector<8x16xf32>
    %67 = arith.addf %65, %66 : vector<8x16xf32>
    %cst_29 = arith.constant 0.000000e+00 : f32
    %68 = vector.broadcast %cst_29 : f32 to vector<8x16xf32>
    %69 = arith.maximumf %67, %68 : vector<8x16xf32>
    %70 = arith.truncf %69 : vector<8x16xf32> to vector<8x16xbf16>
    %cst_30 = arith.constant dense<0.000000e+00> : vector<8x32xf32>
    %71 = tpu.matmul %70, %10, %cst_30 {dimension_numbers = #tpu.dot_dimension_numbers<[1], [0], [0], [1], [0, 0, 1, 1], [], []>} : vector<8x16xbf16>, vector<16x32xbf16>, vector<8x32xf32> -> vector<8x32xf32>
    %72 = vector.broadcast %12 : vector<1x32xf32> to vector<8x32xf32>
    %73 = arith.addf %71, %72 : vector<8x32xf32>
    %cst_31 = arith.constant 0.000000e+00 : f32
    %74 = vector.broadcast %cst_31 : f32 to vector<8x32xf32>
    %75 = arith.maximumf %73, %74 : vector<8x32xf32>
    %76 = arith.maximumf %55, %75 : vector<8x32xf32>
    %77 = vector.extract_strided_slice %1 {offsets = [0, 3], sizes = [8, 1], strides = [1, 1]} : vector<8x8xi32> to vector<8x1xi32>
    %78 = vector.broadcast %77 : vector<8x1xi32> to vector<8x128xi32>
    %79 = arith.cmpi eq, %8, %78 : vector<8x128xi32>
    %80 = arith.extui %79 : vector<8x128xi1> to vector<8x128xi32>
    %81 = arith.sitofp %80 : vector<8x128xi32> to vector<8x128xf32>
    %82 = arith.truncf %81 : vector<8x128xf32> to vector<8x128xbf16>
    %cst_32 = arith.constant dense<0.000000e+00> : vector<8x7xf32>
    %83 = tpu.matmul %82, %5, %cst_32 {dimension_numbers = #tpu.dot_dimension_numbers<[1], [0], [0], [1], [0, 0, 1, 1], [], []>} : vector<8x128xbf16>, vector<128x7xbf16>, vector<8x7xf32> -> vector<8x7xf32>
    %84 = arith.subf %83, %7 : vector<8x7xf32>
    %85 = arith.truncf %84 : vector<8x7xf32> to vector<8x7xbf16>
    %cst_33 = arith.constant dense<0.000000e+00> : vector<8x16xf32>
    %86 = tpu.matmul %85, %9, %cst_33 {dimension_numbers = #tpu.dot_dimension_numbers<[1], [0], [0], [1], [0, 0, 1, 1], [], []>} : vector<8x7xbf16>, vector<7x16xbf16>, vector<8x16xf32> -> vector<8x16xf32>
    %87 = vector.broadcast %11 : vector<1x16xf32> to vector<8x16xf32>
    %88 = arith.addf %86, %87 : vector<8x16xf32>
    %cst_34 = arith.constant 0.000000e+00 : f32
    %89 = vector.broadcast %cst_34 : f32 to vector<8x16xf32>
    %90 = arith.maximumf %88, %89 : vector<8x16xf32>
    %91 = arith.truncf %90 : vector<8x16xf32> to vector<8x16xbf16>
    %cst_35 = arith.constant dense<0.000000e+00> : vector<8x32xf32>
    %92 = tpu.matmul %91, %10, %cst_35 {dimension_numbers = #tpu.dot_dimension_numbers<[1], [0], [0], [1], [0, 0, 1, 1], [], []>} : vector<8x16xbf16>, vector<16x32xbf16>, vector<8x32xf32> -> vector<8x32xf32>
    %93 = vector.broadcast %12 : vector<1x32xf32> to vector<8x32xf32>
    %94 = arith.addf %92, %93 : vector<8x32xf32>
    %cst_36 = arith.constant 0.000000e+00 : f32
    %95 = vector.broadcast %cst_36 : f32 to vector<8x32xf32>
    %96 = arith.maximumf %94, %95 : vector<8x32xf32>
    %97 = arith.maximumf %76, %96 : vector<8x32xf32>
    %98 = vector.extract_strided_slice %1 {offsets = [0, 4], sizes = [8, 1], strides = [1, 1]} : vector<8x8xi32> to vector<8x1xi32>
    %99 = vector.broadcast %98 : vector<8x1xi32> to vector<8x128xi32>
    %100 = arith.cmpi eq, %8, %99 : vector<8x128xi32>
    %101 = arith.extui %100 : vector<8x128xi1> to vector<8x128xi32>
    %102 = arith.sitofp %101 : vector<8x128xi32> to vector<8x128xf32>
    %103 = arith.truncf %102 : vector<8x128xf32> to vector<8x128xbf16>
    %cst_37 = arith.constant dense<0.000000e+00> : vector<8x7xf32>
    %104 = tpu.matmul %103, %5, %cst_37 {dimension_numbers = #tpu.dot_dimension_numbers<[1], [0], [0], [1], [0, 0, 1, 1], [], []>} : vector<8x128xbf16>, vector<128x7xbf16>, vector<8x7xf32> -> vector<8x7xf32>
    %105 = arith.subf %104, %7 : vector<8x7xf32>
    %106 = arith.truncf %105 : vector<8x7xf32> to vector<8x7xbf16>
    %cst_38 = arith.constant dense<0.000000e+00> : vector<8x16xf32>
    %107 = tpu.matmul %106, %9, %cst_38 {dimension_numbers = #tpu.dot_dimension_numbers<[1], [0], [0], [1], [0, 0, 1, 1], [], []>} : vector<8x7xbf16>, vector<7x16xbf16>, vector<8x16xf32> -> vector<8x16xf32>
    %108 = vector.broadcast %11 : vector<1x16xf32> to vector<8x16xf32>
    %109 = arith.addf %107, %108 : vector<8x16xf32>
    %cst_39 = arith.constant 0.000000e+00 : f32
    %110 = vector.broadcast %cst_39 : f32 to vector<8x16xf32>
    %111 = arith.maximumf %109, %110 : vector<8x16xf32>
    %112 = arith.truncf %111 : vector<8x16xf32> to vector<8x16xbf16>
    %cst_40 = arith.constant dense<0.000000e+00> : vector<8x32xf32>
    %113 = tpu.matmul %112, %10, %cst_40 {dimension_numbers = #tpu.dot_dimension_numbers<[1], [0], [0], [1], [0, 0, 1, 1], [], []>} : vector<8x16xbf16>, vector<16x32xbf16>, vector<8x32xf32> -> vector<8x32xf32>
    %114 = vector.broadcast %12 : vector<1x32xf32> to vector<8x32xf32>
    %115 = arith.addf %113, %114 : vector<8x32xf32>
    %cst_41 = arith.constant 0.000000e+00 : f32
    %116 = vector.broadcast %cst_41 : f32 to vector<8x32xf32>
    %117 = arith.maximumf %115, %116 : vector<8x32xf32>
    %118 = arith.maximumf %97, %117 : vector<8x32xf32>
    %119 = vector.extract_strided_slice %1 {offsets = [0, 5], sizes = [8, 1], strides = [1, 1]} : vector<8x8xi32> to vector<8x1xi32>
    %120 = vector.broadcast %119 : vector<8x1xi32> to vector<8x128xi32>
    %121 = arith.cmpi eq, %8, %120 : vector<8x128xi32>
    %122 = arith.extui %121 : vector<8x128xi1> to vector<8x128xi32>
    %123 = arith.sitofp %122 : vector<8x128xi32> to vector<8x128xf32>
    %124 = arith.truncf %123 : vector<8x128xf32> to vector<8x128xbf16>
    %cst_42 = arith.constant dense<0.000000e+00> : vector<8x7xf32>
    %125 = tpu.matmul %124, %5, %cst_42 {dimension_numbers = #tpu.dot_dimension_numbers<[1], [0], [0], [1], [0, 0, 1, 1], [], []>} : vector<8x128xbf16>, vector<128x7xbf16>, vector<8x7xf32> -> vector<8x7xf32>
    %126 = arith.subf %125, %7 : vector<8x7xf32>
    %127 = arith.truncf %126 : vector<8x7xf32> to vector<8x7xbf16>
    %cst_43 = arith.constant dense<0.000000e+00> : vector<8x16xf32>
    %128 = tpu.matmul %127, %9, %cst_43 {dimension_numbers = #tpu.dot_dimension_numbers<[1], [0], [0], [1], [0, 0, 1, 1], [], []>} : vector<8x7xbf16>, vector<7x16xbf16>, vector<8x16xf32> -> vector<8x16xf32>
    %129 = vector.broadcast %11 : vector<1x16xf32> to vector<8x16xf32>
    %130 = arith.addf %128, %129 : vector<8x16xf32>
    %cst_44 = arith.constant 0.000000e+00 : f32
    %131 = vector.broadcast %cst_44 : f32 to vector<8x16xf32>
    %132 = arith.maximumf %130, %131 : vector<8x16xf32>
    %133 = arith.truncf %132 : vector<8x16xf32> to vector<8x16xbf16>
    %cst_45 = arith.constant dense<0.000000e+00> : vector<8x32xf32>
    %134 = tpu.matmul %133, %10, %cst_45 {dimension_numbers = #tpu.dot_dimension_numbers<[1], [0], [0], [1], [0, 0, 1, 1], [], []>} : vector<8x16xbf16>, vector<16x32xbf16>, vector<8x32xf32> -> vector<8x32xf32>
    %135 = vector.broadcast %12 : vector<1x32xf32> to vector<8x32xf32>
    %136 = arith.addf %134, %135 : vector<8x32xf32>
    %cst_46 = arith.constant 0.000000e+00 : f32
    %137 = vector.broadcast %cst_46 : f32 to vector<8x32xf32>
    %138 = arith.maximumf %136, %137 : vector<8x32xf32>
    %139 = arith.maximumf %118, %138 : vector<8x32xf32>
    %140 = vector.extract_strided_slice %1 {offsets = [0, 6], sizes = [8, 1], strides = [1, 1]} : vector<8x8xi32> to vector<8x1xi32>
    %141 = vector.broadcast %140 : vector<8x1xi32> to vector<8x128xi32>
    %142 = arith.cmpi eq, %8, %141 : vector<8x128xi32>
    %143 = arith.extui %142 : vector<8x128xi1> to vector<8x128xi32>
    %144 = arith.sitofp %143 : vector<8x128xi32> to vector<8x128xf32>
    %145 = arith.truncf %144 : vector<8x128xf32> to vector<8x128xbf16>
    %cst_47 = arith.constant dense<0.000000e+00> : vector<8x7xf32>
    %146 = tpu.matmul %145, %5, %cst_47 {dimension_numbers = #tpu.dot_dimension_numbers<[1], [0], [0], [1], [0, 0, 1, 1], [], []>} : vector<8x128xbf16>, vector<128x7xbf16>, vector<8x7xf32> -> vector<8x7xf32>
    %147 = arith.subf %146, %7 : vector<8x7xf32>
    %148 = arith.truncf %147 : vector<8x7xf32> to vector<8x7xbf16>
    %cst_48 = arith.constant dense<0.000000e+00> : vector<8x16xf32>
    %149 = tpu.matmul %148, %9, %cst_48 {dimension_numbers = #tpu.dot_dimension_numbers<[1], [0], [0], [1], [0, 0, 1, 1], [], []>} : vector<8x7xbf16>, vector<7x16xbf16>, vector<8x16xf32> -> vector<8x16xf32>
    %150 = vector.broadcast %11 : vector<1x16xf32> to vector<8x16xf32>
    %151 = arith.addf %149, %150 : vector<8x16xf32>
    %cst_49 = arith.constant 0.000000e+00 : f32
    %152 = vector.broadcast %cst_49 : f32 to vector<8x16xf32>
    %153 = arith.maximumf %151, %152 : vector<8x16xf32>
    %154 = arith.truncf %153 : vector<8x16xf32> to vector<8x16xbf16>
    %cst_50 = arith.constant dense<0.000000e+00> : vector<8x32xf32>
    %155 = tpu.matmul %154, %10, %cst_50 {dimension_numbers = #tpu.dot_dimension_numbers<[1], [0], [0], [1], [0, 0, 1, 1], [], []>} : vector<8x16xbf16>, vector<16x32xbf16>, vector<8x32xf32> -> vector<8x32xf32>
    %156 = vector.broadcast %12 : vector<1x32xf32> to vector<8x32xf32>
    %157 = arith.addf %155, %156 : vector<8x32xf32>
    %cst_51 = arith.constant 0.000000e+00 : f32
    %158 = vector.broadcast %cst_51 : f32 to vector<8x32xf32>
    %159 = arith.maximumf %157, %158 : vector<8x32xf32>
    %160 = arith.maximumf %139, %159 : vector<8x32xf32>
    %161 = vector.extract_strided_slice %1 {offsets = [0, 7], sizes = [8, 1], strides = [1, 1]} : vector<8x8xi32> to vector<8x1xi32>
    %162 = vector.broadcast %161 : vector<8x1xi32> to vector<8x128xi32>
    %163 = arith.cmpi eq, %8, %162 : vector<8x128xi32>
    %164 = arith.extui %163 : vector<8x128xi1> to vector<8x128xi32>
    %165 = arith.sitofp %164 : vector<8x128xi32> to vector<8x128xf32>
    %166 = arith.truncf %165 : vector<8x128xf32> to vector<8x128xbf16>
    %cst_52 = arith.constant dense<0.000000e+00> : vector<8x7xf32>
    %167 = tpu.matmul %166, %5, %cst_52 {dimension_numbers = #tpu.dot_dimension_numbers<[1], [0], [0], [1], [0, 0, 1, 1], [], []>} : vector<8x128xbf16>, vector<128x7xbf16>, vector<8x7xf32> -> vector<8x7xf32>
    %168 = arith.subf %167, %7 : vector<8x7xf32>
    %169 = arith.truncf %168 : vector<8x7xf32> to vector<8x7xbf16>
    %cst_53 = arith.constant dense<0.000000e+00> : vector<8x16xf32>
    %170 = tpu.matmul %169, %9, %cst_53 {dimension_numbers = #tpu.dot_dimension_numbers<[1], [0], [0], [1], [0, 0, 1, 1], [], []>} : vector<8x7xbf16>, vector<7x16xbf16>, vector<8x16xf32> -> vector<8x16xf32>
    %171 = vector.broadcast %11 : vector<1x16xf32> to vector<8x16xf32>
    %172 = arith.addf %170, %171 : vector<8x16xf32>
    %cst_54 = arith.constant 0.000000e+00 : f32
    %173 = vector.broadcast %cst_54 : f32 to vector<8x16xf32>
    %174 = arith.maximumf %172, %173 : vector<8x16xf32>
    %175 = arith.truncf %174 : vector<8x16xf32> to vector<8x16xbf16>
    %cst_55 = arith.constant dense<0.000000e+00> : vector<8x32xf32>
    %176 = tpu.matmul %175, %10, %cst_55 {dimension_numbers = #tpu.dot_dimension_numbers<[1], [0], [0], [1], [0, 0, 1, 1], [], []>} : vector<8x16xbf16>, vector<16x32xbf16>, vector<8x32xf32> -> vector<8x32xf32>
    %177 = vector.broadcast %12 : vector<1x32xf32> to vector<8x32xf32>
    %178 = arith.addf %176, %177 : vector<8x32xf32>
    %cst_56 = arith.constant 0.000000e+00 : f32
    %179 = vector.broadcast %cst_56 : f32 to vector<8x32xf32>
    %180 = arith.maximumf %178, %179 : vector<8x32xf32>
    %181 = arith.maximumf %160, %180 : vector<8x32xf32>
    %c0_57 = arith.constant 0 : index
    %c0_58 = arith.constant 0 : index
    %c0_59 = arith.constant 0 : index
    %182 = vector.load %arg9[%c0_57, %c0_58, %c0_59] : memref<1x8x32xf32, #tpu.memory_space<vmem>>, vector<1x8x32xf32>
    %183 = vector.shape_cast %182 : vector<1x8x32xf32> to vector<8x32xf32>
    %184 = vector.shape_cast %181 : vector<8x32xf32> to vector<1x8x32xf32>
    tpu.vector_store %arg9[%c0_57, %c0_58, %c0_59], %184 {strides = array<i32>} : memref<1x8x32xf32, #tpu.memory_space<vmem>>, vector<1x8x32xf32>,
    return
  }
  func.func @transform_0(%arg0: i32, %arg1: i32) -> (i32, i32, i32) {
    %c0_i32 = arith.constant 0 : i32
    %c0_i32_0 = arith.constant 0 : i32
    return %arg0, %arg1, %c0_i32 : i32, i32, i32
  }
  func.func @transform_1(%arg0: i32, %arg1: i32) -> (i32, i32, i32) {
    %c0_i32 = arith.constant 0 : i32
    %c0_i32_0 = arith.constant 0 : i32
    return %arg0, %arg1, %c0_i32 : i32, i32, i32
  }
  func.func @transform_2(%arg0: i32, %arg1: i32) -> (i32, i32, i32) {
    %c0_i32 = arith.constant 0 : i32
    %c0_i32_0 = arith.constant 0 : i32
    %c0_i32_1 = arith.constant 0 : i32
    return %arg0, %c0_i32, %c0_i32_0 : i32, i32, i32
  }
  func.func @transform_3(%arg0: i32, %arg1: i32) -> (i32, i32) {
    %c0_i32 = arith.constant 0 : i32
    %c0_i32_0 = arith.constant 0 : i32
    %c0_i32_1 = arith.constant 0 : i32
    return %c0_i32, %c0_i32_0 : i32, i32
  }
  func.func @transform_4(%arg0: i32, %arg1: i32) -> (i32, i32) {
    %c0_i32 = arith.constant 0 : i32
    %c0_i32_0 = arith.constant 0 : i32
    %c0_i32_1 = arith.constant 0 : i32
    return %c0_i32, %c0_i32_0 : i32, i32
  }
  func.func @transform_5(%arg0: i32, %arg1: i32) -> (i32, i32) {
    %c0_i32 = arith.constant 0 : i32
    %c0_i32_0 = arith.constant 0 : i32
    %c0_i32_1 = arith.constant 0 : i32
    return %c0_i32, %c0_i32_0 : i32, i32
  }
  func.func @transform_6(%arg0: i32, %arg1: i32) -> (i32, i32) {
    %c0_i32 = arith.constant 0 : i32
    %c0_i32_0 = arith.constant 0 : i32
    %c0_i32_1 = arith.constant 0 : i32
    return %c0_i32, %c0_i32_0 : i32, i32
  }
  func.func @transform_7(%arg0: i32, %arg1: i32) -> (i32, i32, i32) {
    %c0_i32 = arith.constant 0 : i32
    %c0_i32_0 = arith.constant 0 : i32
    return %arg0, %arg1, %c0_i32 : i32, i32, i32
  }
}

</mosaic_0001>

<bundles_post_ra>
// kernel: tpu_custom_call.1
= control target key start
LH: loop header
LB: loop body
LE: loop exit
PB: predicated region body
PF: predicated region fallthrough
CT: control target
= control target key end

     0   :  { %12 = vsyncpa [#allocation3], 0  ;;  %s2761_s0 = inlined_call_operand.vmem [shape: s32[2,8,8], index: 0, kind: input, shape index: {}]   ;;  %s2762_s1 = inlined_call_operand.vmem [shape: f32[2,8,3], index: 1, kind: input, shape index: {}]   ;;  %s2763_s2 = inlined_call_operand.vmem [shape: bf16[2,128,7], index: 2, kind: input, shape index: {}]   ;;  %s2764_s3 = inlined_call_operand.vmem [shape: bf16[7,16], index: 3, kind: input, shape index: {}]   ;;  %s2765_s4 = inlined_call_operand.vmem [shape: f32[1,16], index: 4, kind: input, shape index: {}]   ;;  %s2766_s5 = inlined_call_operand.vmem [shape: bf16[16,32], index: 5, kind: input, shape index: {}]   ;;  %s2767_s6 = inlined_call_operand.vmem [shape: f32[1,32], index: 6, kind: input, shape index: {}]   ;;  %s2768_s7 = inlined_call_operand.hbm [shape: f32[2,8,32], index: 7, kind: output, shape index: {}]  }
   0x1   :  { %14 = vsyncpa [#allocation3 + $0x1], 0  ;;  %s2321_s24 = smov 0   ;;  %s2323_s25 = smov 0  }
   0x2   :  { %s2325_s26 = smov 0   ;;  %s2327_s27 = smov 0  }
   0x3   :  { %s2329_s28 = smov 0   ;;  %s2331_s29 = smov 0  }
   0x4 LB: > { %s1677_s30 = sadd.s32 4294967295, %s2266_s29   ;;  %s1678_s8 = sadd.s32 4294967294, %s2266_s29   ;;  %s2266_s29 = sphi %s2331_s29, %s20_s29   ;;  %s2262_s28 = sphi %s2329_s28, %s2775_s28   ;;  %s2258_s27 = sphi %s2327_s27, %s2774_s27   ;;  %s2254_s26 = sphi %s2325_s26, %s2773_s26   ;;  %s2250_s25 = sphi %s2323_s25, %s2772_s25   ;;  %s2246_s24 = sphi %s2321_s24, %s2771_s24  }
   0x5   : > { %s32_s9 = sadd.s32 1, %s2262_s28  ;;  %s207_s10 = sadd.s32 1, %s2254_s26 }
   0x6   : > { %p34_p0 = scmp.ge.s32.totalorder %s32_s9, 2  ;;  %p217_p1 = scmp.ne.s32.totalorder %s2254_s26, %s2250_s25 }
   0x7   : > { %p218_p2 = scmp.eq.s32.totalorder %s1677_s30, 1  ;;  %p223_p3 = scmp.ne.s32.totalorder %s2250_s25, %s2246_s24 }
   0x8   : > { %s2777_s9 = smov (%p34_p0, %s32_s9), 0  ;;  %p224_p5 = scmp.eq.s32.totalorder %s1678_s8, 1 }
   0x9   : > { %p2361_p4 = por %p218_p2, %p217_p1  ;;  %s202_s12 = ssub.s32 %s2262_s28, %s2777_s9 }
   0xa   : > { %p1681_p6 = scmp.ge.s32.totalorder %s2266_s29, 1  ;;  %p205_p7 = scmp.eq.s32.totalorder %s202_s12, 0 }
   0xb   : > { %p2368_p8 = por %p224_p5, %p223_p3  ;;  %p282_p9 = scmp.lt.s32.totalorder %s2266_s29, 3 }
   0xc   : > { %s2374_s14 = scalar_select %p205_p7, %s2254_s26, %s207_s10  }
   0xd   : > { %p283_p10 = pnand %p1681_p6, %p282_p9 }
   0xe   : > { %p328_p11 = scmp.lt.s32.totalorder (!%p283_p10), %s2258_s27, 1  ;;  %v2268_v0 = vmov (!%p283_p10), 0   ;;  %v2269_v1 = vmov (!%p283_p10), 0.0   ;;  %vm2270_vm0 = vmmov (!%p283_p10), 0   ;;  %v368_v11 = vlaneseq (!%p283_p10)  ;;  %v370_v17 = vld [vmem:[%s2764_s3] sm:$0xf] (!%p283_p10) }
   0xf   : > { %286 = sbr.rel (%p283_p10) target bundleno = 3845 (0xf05), region = 48  ;;  %2170 = vset.pattern.permute.xlu0 (!%p283_p10), %v2268_v0  ;;  %1847 = vmatprep.subr.bf16.mxu0 (!%p283_p10), %v2269_v1  ;;  %v2271_v14 = vmov (!%p283_p10), 1.0|1.0   ;;  %vm482_vm3 = vcmask (!%p283_p10), 1042432   ;;  %vm483_vm4 = vcmask (!%p283_p10), 1043456   ;;  %v2272_v15 = vmov (!%p283_p10), 65535  }
  0x10   : > { %1867 = vmatprep.subr.bf16.mxu1 (!%p283_p10), %v2269_v1  ;;  %1863 = vmatprep.mubr.msk.bf16.mxu0 (!%p283_p10), %vm2270_vm0, %v2269_v1  ;;  %v2431_v12 = vand.u32 (!%p283_p10), 127, %v368_v11  ;;  %v484_v16 = vsel (!%p283_p10), %vm482_vm3, 4294967295, %v2272_v15  ;;  %v2273_v20 = vmov (!%p283_p10), 1   ;;  %vm366_vm5 = vcmask (!%p283_p10), 23552   ;;  %v2458_v27 = vld [vmem:[%s2766_s5] sm:$0xff] (!%p283_p10)   ;;  %s325_s22 = sand.u32 (!%p283_p10), 1, %s2250_s25  }
  0x11   : > { %1869 = vmatprep.mubr.msk.bf16.mxu1 (!%p283_p10), %vm2270_vm0, %v2269_v1  ;;  %v485_v18 = vsel (!%p283_p10), %vm483_vm4, %v484_v16, 0  ;;  %vm478_vm6 = vcmask (!%p283_p10), 56320   ;;  %v2274_v30 = vmov (!%p283_p10), 2   ;;  %v2469_v31 = vld [vmem:[%s2765_s4] ss:$0 sm:$0xff] (!%p283_p10)  ;;  %vm543_vm7 = vcmask (!%p283_p10), 130048  }
  0x12   : > { %v2440_v19 = vand.u32 (!%p283_p10), %v485_v18, %v370_v17  ;;  %2172 = vset.pattern.permute.xlu1 (!%p283_p10), %v2274_v30  ;;  %v2275_v55 = vmov (!%p283_p10), 3   ;;  %v2539_v11 = vld [vmem:[%s2767_s6] ss:$0 sm:$0xff] (!%p283_p10)  ;;  %s1739_s30 = sshll.u32 (!%p283_p10), %s2258_s27, 7  ;;  %s1565_s19 = scalar_lea.sflag (!%p283_p10), [#allocation3], %s325_s22 }
  0x13   : > { %s2714_s18 = scalar_lea.hbm (!%p283_p10), %s2768_s7, %s1739_s30 }
  0x14   : > { %1868 = vmatpush3.bf16.msra.mxu1 (!%p283_p10), %v2440_v19 }
  0x15   : > { %1873 = vmatprep.subr.bf16.mxu1 (!%p283_p10), %v2269_v1 }
  0x16   : > { %s2379_s15 = scalar_select %p328_p11, %s2258_s27, 1 }
  0x17   : > { %s2280_s27 = smov [#allocation2]  }
  0x18   : > { %s1683_s16 = sshll.u32 %s2379_s15, 3  ;;  %s1742_s17 = sshll.u32 %s2379_s15, 6 }
  0x19   : > { %s334_s20 = scalar_lea.vmem %s2761_s0, %s1683_s16  ;;  %s346_s23 = scalar_lea.vmem %s2763_s2, %s1742_s17 }
  0x1a   : > { %v2392_v2 = vld [vmem:[%s334_s20] sm:$0xff]  ;;  %v2402_v4 = vld [vmem:[%s346_s23 + $0x8] sm:$0xff]   ;;  %v2406_v5 = vld [vmem:[%s346_s23 + $0x10] sm:$0xff]   ;;  %s341_s17 = scalar_lea.vmem %s2762_s1, %s1683_s16  ;;  %s2192_s16 = sshll.u32 %s2280_s27, 4  ;;  %s2193_s16 = int_to_ptr.vmem [resolvable:$false] %s2192_s16 }
  0x1b   : > { %376 = vperm.xlu0 %2170, %v2392_v2   ;;  %v2395_v3 = vld [vmem:[%s346_s23] sm:$0xff]   ;;  %v2410_v6 = vld [vmem:[%s346_s23 + $0x18] sm:$0xff]   ;;  %v2418_v8 = vld [vmem:[%s346_s23 + $0x28] sm:$0xff]   ;;  %729 = vperm.xlu1 %2172, %v2392_v2   ;;  %s2194_s20 = scalar_lea.vmem %s2193_s16, 256 }
  0x1c   : > { %1848 = vmatpush3.bf16.msra.mxu0 %v2395_v3  ;;  %v2414_v7 = vld [vmem:[%s346_s23 + $0x20] sm:$0xff]   ;;  %v2422_v9 = vld [vmem:[%s346_s23 + $0x30] sm:$0xff]   ;;  %v2426_v10 = vld [vmem:[%s346_s23 + $0x38] sm:$0xff]   ;;  %s1682_s23 = sshll.u32 %s325_s22, 3 }
  0x1d   : > { %1849 = vmatprep.subr.bf16.mxu0 %v2269_v1  ;;  %v349_v21 = vld [vmem:[%s341_s17] sm:$0xff]  ;;  %s327_s8 = scalar_lea.vmem [#allocation2], %s1682_s23 }
  0x1e   : > { %v2452_v22 = vsel %vm366_vm5, %v349_v21, 0.0  ;;  %s1579_s10 = sshll.u32 %s327_s8, 4  ;;  %s2716_s10 = int_to_ptr.vmem [resolvable:$true] %s1579_s10 }
  0x1f   : > { %2171 = vset.pattern.permute.xlu0 %v2273_v20  ;;  %2173 = vset.pattern.permute.xlu1 %v2275_v55  ;;  %s2188_s15 = scalar_lea.vmem %s2716_s10, 128  ;;  %p2195_p1 = scmp.lt.s32.totalorder %s2716_s10, %s2193_s16 }
  0x20   : > { %1850 = vmatpush3.bf16.msra.mxu0 %v2402_v4  ;;  %590 = vperm.xlu0 %2171, %v2392_v2   ;;  %p2189_p12 = scmp.ne.s32.totalorder %s2716_s10, %s2188_s15  ;;  %p2196_p2 = scmp.lt.s32.totalorder %s2194_s20, %s2188_s15 }
  0x21   : > { %1851 = vmatprep.subr.bf16.mxu0 %v2269_v1  ;;  %868 = vperm.xlu1 %2173, %v2392_v2  }
  0x22   : > { %p2190_p13 = pnand %p2189_p12, %p2361_p4  ;;  %p2197_p3 = por %p2196_p2, %p2195_p1 }
  0x24   : > { %1852 = vmatpush3.bf16.msra.mxu0 %v2406_v5  ;;  %p2191_p0 = pneg %p2190_p13 }
  0x25   : > { %1853 = vmatprep.subr.bf16.mxu0 %v2269_v1 }
  0x26   : > { %p2198_p5 = pnand %p2197_p3, %p2191_p0 }
  0x28   : > { %1854 = vmatpush3.bf16.msra.mxu0 %v2410_v6 }
  0x29   : > { %1855 = vmatprep.subr.bf16.mxu0 %v2269_v1 }
  0x2c   : > { %1856 = vmatpush3.bf16.msra.mxu0 %v2414_v7 }
  0x2d   : > { %1857 = vmatprep.subr.bf16.mxu0 %v2269_v1 }
  0x30   : > { %1858 = vmatpush3.bf16.msra.mxu0 %v2418_v8 }
  0x31   : > { %1859 = vmatprep.subr.bf16.mxu0 %v2269_v1 }
  0x34   : > { %1860 = vmatpush3.bf16.msra.mxu0 %v2422_v9 }
  0x35   : > { %1861 = vmatprep.subr.bf16.mxu0 %v2269_v1 }
  0x38   : > { %1862 = vmatpush3.bf16.msra.mxu0 %v2426_v10 }
  0x39   : > { %1899 = vmatprep.subr.bf16.mxu0 %v2269_v1 }
  0x9a   : > { %v377_v13 = vpop.permute.xlu0 %376  ;;  %v730_v40 = vpop.permute.xlu1 %729 }
  0x9b   : > { %vm378_vm1 = vcmp.eq.s32.totalorder %v2431_v12, %v377_v13  ;;  %vm731_vm10 = vcmp.eq.s32.totalorder %v2431_v12, %v730_v40 }
  0x9c   : > { %vm1696_vm2 = vmpackc.low %vm378_vm1, %vm378_vm1 }
  0x9d   : > { %1864 = vmatmul.mubr.msk.bf16.vlgmr.msra.gmra.mrb[0].mxu0 %vm1696_vm2, %v2271_v14  ;;  %vm1709_vm11 = vmpackc.low %vm731_vm10, %vm731_vm10 }
  0x9e   : > { %1901 = vmatprep.mubr.msk.bf16.mxu0 %vm2270_vm0, %v2269_v1  ;;  %1900 = vmatpush3.bf16.msra.mxu0 %v2440_v19 }
  0x9f   : > { %1905 = vmatprep.subr.bf16.mxu0 %v2269_v1  ;;  %v591_v39 = vpop.permute.xlu0 %590 }
  0xa0   : > { %vm592_vm8 = vcmp.eq.s32.totalorder %v2431_v12, %v591_v39 }
  0xa1   : > { %vm1704_vm9 = vmpackc.low %vm592_vm8, %vm592_vm8 }
 0x170   : > { %v464_v23 = vpop.f32.mrb[0].mxu0 }
 0x171   : > { %v470_v24 = vsub.f32 %v464_v23, %v2452_v22  ;;  %v1865_v25 = vpop.f32.mrb[1].mxu0 }
 0x172   : > { %v467_v26 = vpop.f32.mrb[2].mxu0 }
 0x173   : > { %v471_v28 = vpack.c.bf16 %v470_v24, %v470_v24  ;;  %v1866_v29 = vpop.f32.mrb[3].mxu0 }
 0x175   : > { %1870 = vmatmul.mubr.msk.bf16.vlgmr.msra.gmra.mrb[0].mxu1 %vm478_vm6, %v471_v28 }
 0x176   : > { %1874 = vmatpush3.bf16.msra.mxu1 %v2458_v27  ;;  %1875 = vmatprep.mubr.msk.bf16.mxu1 %vm2270_vm0, %v2269_v1 }
 0x177   : > { %1879 = vmatprep.subr.bf16.mxu1 %v2269_v1 }
 0x248   : > { %v523_v32 = vpop.f32.mrb[0].mxu1 }
 0x249   : > { %v524_v33 = vadd.f32 %v2469_v31, %v523_v32  ;;  %v1871_v34 = vpop.f32.mrb[1].mxu1 }
 0x24a   : > { %v526_v35 = vpop.f32.mrb[2].mxu1 }
 0x24b   : > { %v529_v36 = vmax.f32 %v524_v33, 0.0  ;;  %v1872_v37 = vpop.f32.mrb[3].mxu1  ;;  %v869_v35 = vpop.permute.xlu1 %868 }
 0x24c   : > { %vm870_vm12 = vcmp.eq.s32.totalorder %v2431_v12, %v869_v35 }
 0x24d   : > { %v530_v38 = vpack.c.bf16 %v529_v36, %v529_v36  ;;  %vm1714_vm13 = vmpackc.low %vm870_vm12, %vm870_vm12  ;;  %v2276_v36 = vmov 4  }
 0x24e   : > { %2174 = vset.pattern.permute.xlu1 %v2276_v36 }
 0x24f   : > { %1876 = vmatmul.mubr.msk.bf16.vlgmr.msra.gmra.mrb[4].mxu1 %vm543_vm7, %v530_v38  ;;  %1007 = vperm.xlu1 %2174, %v2392_v2  }
 0x250   : > { %1880 = vmatpush3.bf16.msra.mxu1 %v2395_v3  ;;  %1895 = vmatprep.mubr.msk.bf16.mxu1 %vm2270_vm0, %v2269_v1 }
 0x251   : > { %1881 = vmatprep.subr.bf16.mxu1 %v2269_v1 }
 0x254   : > { %1882 = vmatpush3.bf16.msra.mxu1 %v2402_v4 }
 0x255   : > { %1883 = vmatprep.subr.bf16.mxu1 %v2269_v1 }
 0x258   : > { %1884 = vmatpush3.bf16.msra.mxu1 %v2406_v5 }
 0x259   : > { %1885 = vmatprep.subr.bf16.mxu1 %v2269_v1 }
 0x25c   : > { %1886 = vmatpush3.bf16.msra.mxu1 %v2410_v6 }
 0x25d   : > { %1887 = vmatprep.subr.bf16.mxu1 %v2269_v1 }
 0x260   : > { %1888 = vmatpush3.bf16.msra.mxu1 %v2414_v7 }
 0x261   : > { %1889 = vmatprep.subr.bf16.mxu1 %v2269_v1 }
 0x264   : > { %1890 = vmatpush3.bf16.msra.mxu1 %v2418_v8 }
 0x265   : > { %1891 = vmatprep.subr.bf16.mxu1 %v2269_v1 }
 0x268   : > { %1892 = vmatpush3.bf16.msra.mxu1 %v2422_v9 }
 0x269   : > { %1893 = vmatprep.subr.bf16.mxu1 %v2269_v1 }
 0x26c   : > { %1894 = vmatpush3.bf16.msra.mxu1 %v2426_v10 }
 0x26d   : > { %1911 = vmatprep.subr.bf16.mxu1 %v2269_v1 }
 0x26f   : > { %1896 = vmatmul.mubr.msk.bf16.vlgmr.msra.gmra.mrb[8].mxu1 %vm1704_vm9, %v2271_v14 }
 0x270   : > { %1912 = vmatpush3.bf16.msra.mxu1 %v2395_v3  ;;  %1927 = vmatprep.mubr.msk.bf16.mxu1 %vm2270_vm0, %v2269_v1 }
 0x271   : > { %1913 = vmatprep.subr.bf16.mxu1 %v2269_v1 }
 0x274   : > { %1914 = vmatpush3.bf16.msra.mxu1 %v2402_v4 }
 0x275   : > { %1915 = vmatprep.subr.bf16.mxu1 %v2269_v1 }
 0x278   : > { %1916 = vmatpush3.bf16.msra.mxu1 %v2406_v5 }
 0x279   : > { %1917 = vmatprep.subr.bf16.mxu1 %v2269_v1 }
 0x27c   : > { %1918 = vmatpush3.bf16.msra.mxu1 %v2410_v6 }
 0x27d   : > { %1919 = vmatprep.subr.bf16.mxu1 %v2269_v1 }
 0x280   : > { %1920 = vmatpush3.bf16.msra.mxu1 %v2414_v7 }
 0x281   : > { %1921 = vmatprep.subr.bf16.mxu1 %v2269_v1 }
 0x284   : > { %1922 = vmatpush3.bf16.msra.mxu1 %v2418_v8 }
 0x285   : > { %1923 = vmatprep.subr.bf16.mxu1 %v2269_v1 }
 0x288   : > { %1924 = vmatpush3.bf16.msra.mxu1 %v2422_v9 }
 0x289   : > { %1925 = vmatprep.subr.bf16.mxu1 %v2269_v1 }
 0x28c   : > { %1926 = vmatpush3.bf16.msra.mxu1 %v2426_v10 }
 0x28d   : > { %1963 = vmatprep.subr.bf16.mxu1 %v2269_v1 }
 0x28f   : > { %1928 = vmatmul.mubr.msk.bf16.vlgmr.msra.gmra.mrb[12].mxu1 %vm1709_vm11, %v2271_v14 }
 0x290   : > { %1964 = vmatpush3.bf16.msra.mxu1 %v2440_v19  ;;  %1965 = vmatprep.mubr.msk.bf16.mxu1 %vm2270_vm0, %v2269_v1 }
 0x291   : > { %1969 = vmatprep.subr.bf16.mxu1 %v2269_v1 }
 0x322   : > { %v581_v41 = vpop.f32.mrb[4].mxu1 }
 0x323   : > { %v1877_v42 = vpop.f32.mrb[5].mxu1  ;;  %v582_v13 = vadd.f32 %v2539_v11, %v581_v41 }
 0x324   : > { %v584_v43 = vpop.f32.mrb[6].mxu1 }
 0x325   : > { %v1878_v44 = vpop.f32.mrb[7].mxu1  ;;  %v587_v15 = vmax.f32 %v582_v13, 0.0 }
 0x327   : > { %v588_v21 = vmax.f32 %v587_v15, 0.0 }
 0x342   : > { %v630_v45 = vpop.f32.mrb[8].mxu1 }
 0x343   : > { %v636_v46 = vsub.f32 %v630_v45, %v2452_v22  ;;  %v1897_v47 = vpop.f32.mrb[9].mxu1 }
 0x344   : > { %v633_v48 = vpop.f32.mrb[10].mxu1 }
 0x345   : > { %v637_v49 = vpack.c.bf16 %v636_v46, %v636_v46  ;;  %v1898_v50 = vpop.f32.mrb[11].mxu1 }
 0x347   : > { %1902 = vmatmul.mubr.msk.bf16.vlgmr.msra.gmra.mrb[4].mxu0 %vm478_vm6, %v637_v49 }
 0x348   : > { %1906 = vmatpush3.bf16.msra.mxu0 %v2458_v27  ;;  %1907 = vmatprep.mubr.msk.bf16.mxu0 %vm2270_vm0, %v2269_v1 }
 0x349   : > { %1931 = vmatprep.subr.bf16.mxu0 %v2269_v1 }
 0x362   : > { %v769_v51 = vpop.f32.mrb[12].mxu1 }
 0x363   : > { %v1929_v52 = vpop.f32.mrb[13].mxu1  ;;  %v775_v63 = vsub.f32 %v769_v51, %v2452_v22 }
 0x364   : > { %v772_v53 = vpop.f32.mrb[14].mxu1 }
 0x365   : > { %v1930_v54 = vpop.f32.mrb[15].mxu1  ;;  %v776_v0 = vpack.c.bf16 %v775_v63, %v775_v63 }
 0x41a   : > { %v675_v56 = vpop.f32.mrb[4].mxu0 }
 0x41b   : > { %v676_v57 = vadd.f32 %v2469_v31, %v675_v56  ;;  %v1903_v58 = vpop.f32.mrb[5].mxu0 }
 0x41c   : > { %v678_v59 = vpop.f32.mrb[6].mxu0  ;;  %v2277_v58 = vmov 5  }
 0x41d   : > { %v681_v60 = vmax.f32 %v676_v57, 0.0  ;;  %v1904_v61 = vpop.f32.mrb[7].mxu0  ;;  %v1008_v57 = vpop.permute.xlu1 %1007  ;;  %2175 = vset.pattern.permute.xlu0 %v2277_v58 }
 0x41e   : > { %vm1009_vm14 = vcmp.eq.s32.totalorder %v2431_v12, %v1008_v57  ;;  %1146 = vperm.xlu0 %2175, %v2392_v2  }
 0x41f   : > { %v682_v62 = vpack.c.bf16 %v681_v60, %v681_v60  ;;  %vm1719_vm15 = vmpackc.low %vm1009_vm14, %vm1009_vm14 }
 0x421   : > { %1908 = vmatmul.mubr.msk.bf16.vlgmr.msra.gmra.mrb[8].mxu0 %vm543_vm7, %v682_v62 }
 0x422   : > { %1932 = vmatpush3.bf16.msra.mxu0 %v2440_v19  ;;  %1933 = vmatprep.mubr.msk.bf16.mxu0 %vm2270_vm0, %v2269_v1 }
 0x423   : > { %1937 = vmatprep.subr.bf16.mxu0 %v2269_v1 }
 0x429   : > { %1934 = vmatmul.mubr.msk.bf16.vlgmr.msra.gmra.mrb[12].mxu0 %vm478_vm6, %v776_v0 }
 0x42a   : > { %1938 = vmatpush3.bf16.msra.mxu0 %v2458_v27  ;;  %1939 = vmatprep.mubr.msk.bf16.mxu0 %vm2270_vm0, %v2269_v1 }
 0x42b   : > { %1943 = vmatprep.subr.bf16.mxu0 %v2269_v1 }
 0x4f4   : > { %v720_v16 = vpop.f32.mrb[8].mxu0 }
 0x4f5   : > { %v721_v17 = vadd.f32 %v2539_v11, %v720_v16  ;;  %v1909_v18 = vpop.f32.mrb[9].mxu0 }
 0x4f6   : > { %v723_v20 = vpop.f32.mrb[10].mxu0 }
 0x4f7   : > { %v726_v23 = vmax.f32 %v721_v17, 0.0  ;;  %v1910_v24 = vpop.f32.mrb[11].mxu0 }
 0x4f9   : > { %v727_v25 = vmax.f32 %v588_v21, %v726_v23 }
 0x4fc   : > { %v814_v26 = vpop.f32.mrb[12].mxu0 }
 0x4fd   : > { %v815_v28 = vadd.f32 %v2469_v31, %v814_v26  ;;  %v1935_v29 = vpop.f32.mrb[13].mxu0 }
 0x4fe   : > { %v817_v30 = vpop.f32.mrb[14].mxu0 }
 0x4ff   : > { %v820_v32 = vmax.f32 %v815_v28, 0.0  ;;  %v1936_v33 = vpop.f32.mrb[15].mxu0 }
 0x500   : > { %v2278_v33 = vmov 6  }
 0x501   : > { %v821_v34 = vpack.c.bf16 %v820_v32, %v820_v32  ;;  %v1147_v32 = vpop.permute.xlu0 %1146  ;;  %2176 = vset.pattern.permute.xlu1 %v2278_v33 }
 0x502   : > { %vm1148_vm1 = vcmp.eq.s32.totalorder %v2431_v12, %v1147_v32  ;;  %1285 = vperm.xlu1 %2176, %v2392_v2  }
 0x503   : > { %1940 = vmatmul.mubr.msk.bf16.vlgmr.msra.gmra.mrb[16].mxu0 %vm543_vm7, %v821_v34  ;;  %vm1724_vm2 = vmpackc.low %vm1148_vm1, %vm1148_vm1 }
 0x504   : > { %1944 = vmatpush3.bf16.msra.mxu0 %v2395_v3  ;;  %1959 = vmatprep.mubr.msk.bf16.mxu0 %vm2270_vm0, %v2269_v1 }
 0x505   : > { %1945 = vmatprep.subr.bf16.mxu0 %v2269_v1 }
 0x508   : > { %1946 = vmatpush3.bf16.msra.mxu0 %v2402_v4 }
 0x509   : > { %1947 = vmatprep.subr.bf16.mxu0 %v2269_v1 }
 0x50c   : > { %1948 = vmatpush3.bf16.msra.mxu0 %v2406_v5 }
 0x50d   : > { %1949 = vmatprep.subr.bf16.mxu0 %v2269_v1 }
 0x510   : > { %1950 = vmatpush3.bf16.msra.mxu0 %v2410_v6 }
 0x511   : > { %1951 = vmatprep.subr.bf16.mxu0 %v2269_v1 }
 0x514   : > { %1952 = vmatpush3.bf16.msra.mxu0 %v2414_v7 }
 0x515   : > { %1953 = vmatprep.subr.bf16.mxu0 %v2269_v1 }
 0x518   : > { %1954 = vmatpush3.bf16.msra.mxu0 %v2418_v8 }
 0x519   : > { %1955 = vmatprep.subr.bf16.mxu0 %v2269_v1 }
 0x51c   : > { %1956 = vmatpush3.bf16.msra.mxu0 %v2422_v9 }
 0x51d   : > { %1957 = vmatprep.subr.bf16.mxu0 %v2269_v1 }
 0x520   : > { %1958 = vmatpush3.bf16.msra.mxu0 %v2426_v10 }
 0x521   : > { %1995 = vmatprep.subr.bf16.mxu0 %v2269_v1 }
 0x523   : > { %1960 = vmatmul.mubr.msk.bf16.vlgmr.msra.gmra.mrb[20].mxu0 %vm1714_vm13, %v2271_v14 }
 0x524   : > { %1996 = vmatpush3.bf16.msra.mxu0 %v2440_v19  ;;  %1997 = vmatprep.mubr.msk.bf16.mxu0 %vm2270_vm0, %v2269_v1 }
 0x525   : > { %2001 = vmatprep.subr.bf16.mxu0 %v2269_v1 }
 0x5d6   : > { %v859_v37 = vpop.f32.mrb[16].mxu0 }
 0x5d7   : > { %v860_v38 = vadd.f32 %v2539_v11, %v859_v37  ;;  %v1941_v39 = vpop.f32.mrb[17].mxu0 }
 0x5d8   : > { %v862_v40 = vpop.f32.mrb[18].mxu0 }
 0x5d9   : > { %v865_v41 = vmax.f32 %v860_v38, 0.0  ;;  %v1942_v42 = vpop.f32.mrb[19].mxu0 }
 0x5db   : > { %v866_v43 = vmax.f32 %v727_v25, %v865_v41 }
 0x5f6   : > { %v908_v44 = vpop.f32.mrb[20].mxu0 }
 0x5f7   : > { %v914_v45 = vsub.f32 %v908_v44, %v2452_v22  ;;  %v1961_v46 = vpop.f32.mrb[21].mxu0 }
 0x5f8   : > { %v911_v47 = vpop.f32.mrb[22].mxu0 }
 0x5f9   : > { %v915_v48 = vpack.c.bf16 %v914_v45, %v914_v45  ;;  %v1962_v49 = vpop.f32.mrb[23].mxu0 }
 0x5fb   : > { %1966 = vmatmul.mubr.msk.bf16.vlgmr.msra.gmra.mrb[16].mxu1 %vm478_vm6, %v915_v48 }
 0x5fc   : > { %1970 = vmatpush3.bf16.msra.mxu1 %v2458_v27  ;;  %1971 = vmatprep.mubr.msk.bf16.mxu1 %vm2270_vm0, %v2269_v1 }
 0x5fd   : > { %1975 = vmatprep.subr.bf16.mxu1 %v2269_v1 }
 0x6ce   : > { %v953_v50 = vpop.f32.mrb[16].mxu1 }
 0x6cf   : > { %v954_v51 = vadd.f32 %v2469_v31, %v953_v50  ;;  %v1967_v52 = vpop.f32.mrb[17].mxu1 }
 0x6d0   : > { %v956_v53 = vpop.f32.mrb[18].mxu1 }
 0x6d1   : > { %v959_v54 = vmax.f32 %v954_v51, 0.0  ;;  %v1968_v55 = vpop.f32.mrb[19].mxu1 }
 0x6d2   : > { %v2279_v55 = vmov 7  }
 0x6d3   : > { %v960_v56 = vpack.c.bf16 %v959_v54, %v959_v54  ;;  %v1286_v54 = vpop.permute.xlu1 %1285  ;;  %2177 = vset.pattern.permute.xlu1 %v2279_v55  ;;  %2178 = vset.pattern.permute.xlu0 %v2279_v55 }
 0x6d4   : > { %vm1287_vm3 = vcmp.eq.s32.totalorder %v2431_v12, %v1286_v54  ;;  %1424 = vperm.xlu1 %2177, %v2392_v2  }
 0x6d5   : > { %1972 = vmatmul.mubr.msk.bf16.vlgmr.msra.gmra.mrb[20].mxu1 %vm543_vm7, %v960_v56  ;;  %vm1729_vm4 = vmpackc.low %vm1287_vm3, %vm1287_vm3 }
 0x6d6   : > { %1976 = vmatpush3.bf16.msra.mxu1 %v2395_v3  ;;  %1991 = vmatprep.mubr.msk.bf16.mxu1 %vm2270_vm0, %v2269_v1 }
 0x6d7   : > { %1977 = vmatprep.subr.bf16.mxu1 %v2269_v1 }
 0x6da   : > { %1978 = vmatpush3.bf16.msra.mxu1 %v2402_v4 }
 0x6db   : > { %1979 = vmatprep.subr.bf16.mxu1 %v2269_v1 }
 0x6de   : > { %1980 = vmatpush3.bf16.msra.mxu1 %v2406_v5 }
 0x6df   : > { %1981 = vmatprep.subr.bf16.mxu1 %v2269_v1 }
 0x6e2   : > { %1982 = vmatpush3.bf16.msra.mxu1 %v2410_v6 }
 0x6e3   : > { %1983 = vmatprep.subr.bf16.mxu1 %v2269_v1 }
 0x6e6   : > { %1984 = vmatpush3.bf16.msra.mxu1 %v2414_v7 }
 0x6e7   : > { %1985 = vmatprep.subr.bf16.mxu1 %v2269_v1 }
 0x6ea   : > { %1986 = vmatpush3.bf16.msra.mxu1 %v2418_v8 }
 0x6eb   : > { %1987 = vmatprep.subr.bf16.mxu1 %v2269_v1 }
 0x6ee   : > { %1988 = vmatpush3.bf16.msra.mxu1 %v2422_v9 }
 0x6ef   : > { %1989 = vmatprep.subr.bf16.mxu1 %v2269_v1 }
 0x6f2   : > { %1990 = vmatpush3.bf16.msra.mxu1 %v2426_v10 }
 0x6f3   : > { %2027 = vmatprep.subr.bf16.mxu1 %v2269_v1 }
 0x6f5   : > { %1992 = vmatmul.mubr.msk.bf16.vlgmr.msra.gmra.mrb[24].mxu1 %vm1719_vm15, %v2271_v14 }
 0x6f6   : > { %2028 = vmatpush3.bf16.msra.mxu1 %v2440_v19  ;;  %2029 = vmatprep.mubr.msk.bf16.mxu1 %vm2270_vm0, %v2269_v1 }
 0x6f7   : > { %2033 = vmatprep.subr.bf16.mxu1 %v2269_v1 }
 0x7a8   : > { %v998_v59 = vpop.f32.mrb[20].mxu1 }
 0x7a9   : > { %v999_v60 = vadd.f32 %v2539_v11, %v998_v59  ;;  %v1973_v61 = vpop.f32.mrb[21].mxu1 }
 0x7aa   : > { %v1001_v62 = vpop.f32.mrb[22].mxu1 }
 0x7ab   : > { %v1004_v63 = vmax.f32 %v999_v60, 0.0  ;;  %v1974_v0 = vpop.f32.mrb[23].mxu1 }
 0x7ad   : > { %v1005_v13 = vmax.f32 %v866_v43, %v1004_v63 }
 0x7c8   : > { %v1047_v15 = vpop.f32.mrb[24].mxu1 }
 0x7c9   : > { %v1053_v16 = vsub.f32 %v1047_v15, %v2452_v22  ;;  %v1993_v17 = vpop.f32.mrb[25].mxu1 }
 0x7ca   : > { %v1050_v18 = vpop.f32.mrb[26].mxu1 }
 0x7cb   : > { %v1054_v20 = vpack.c.bf16 %v1053_v16, %v1053_v16  ;;  %v1994_v21 = vpop.f32.mrb[27].mxu1 }
 0x7cd   : > { %1998 = vmatmul.mubr.msk.bf16.vlgmr.msra.gmra.mrb[24].mxu0 %vm478_vm6, %v1054_v20 }
 0x7ce   : > { %2002 = vmatpush3.bf16.msra.mxu0 %v2458_v27  ;;  %2003 = vmatprep.mubr.msk.bf16.mxu0 %vm2270_vm0, %v2269_v1 }
 0x7cf   : > { %2007 = vmatprep.subr.bf16.mxu0 %v2269_v1 }
 0x8a0   : > { %v1092_v23 = vpop.f32.mrb[24].mxu0 }
 0x8a1   : > { %v1093_v24 = vadd.f32 %v2469_v31, %v1092_v23  ;;  %v1999_v25 = vpop.f32.mrb[25].mxu0 }
 0x8a2   : > { %v1095_v26 = vpop.f32.mrb[26].mxu0 }
 0x8a3   : > { %v1098_v28 = vmax.f32 %v1093_v24, 0.0  ;;  %v2000_v29 = vpop.f32.mrb[27].mxu0 }
 0x8a5   : > { %v1099_v30 = vpack.c.bf16 %v1098_v28, %v1098_v28 }
 0x8a7   : > { %2004 = vmatmul.mubr.msk.bf16.vlgmr.msra.gmra.mrb[28].mxu0 %vm543_vm7, %v1099_v30 }
 0x8a8   : > { %2008 = vmatpush3.bf16.msra.mxu0 %v2395_v3  ;;  %2023 = vmatprep.mubr.msk.bf16.mxu0 %vm2270_vm0, %v2269_v1 }
 0x8a9   : > { %2009 = vmatprep.subr.bf16.mxu0 %v2269_v1 }
 0x8ac   : > { %2010 = vmatpush3.bf16.msra.mxu0 %v2402_v4 }
 0x8ad   : > { %2011 = vmatprep.subr.bf16.mxu0 %v2269_v1 }
 0x8b0   : > { %2012 = vmatpush3.bf16.msra.mxu0 %v2406_v5 }
 0x8b1   : > { %2013 = vmatprep.subr.bf16.mxu0 %v2269_v1 }
 0x8b4   : > { %2014 = vmatpush3.bf16.msra.mxu0 %v2410_v6 }
 0x8b5   : > { %2015 = vmatprep.subr.bf16.mxu0 %v2269_v1 }
 0x8b8   : > { %2016 = vmatpush3.bf16.msra.mxu0 %v2414_v7 }
 0x8b9   : > { %2017 = vmatprep.subr.bf16.mxu0 %v2269_v1 }
 0x8bc   : > { %2018 = vmatpush3.bf16.msra.mxu0 %v2418_v8 }
 0x8bd   : > { %2019 = vmatprep.subr.bf16.mxu0 %v2269_v1 }
 0x8c0   : > { %2020 = vmatpush3.bf16.msra.mxu0 %v2422_v9 }
 0x8c1   : > { %2021 = vmatprep.subr.bf16.mxu0 %v2269_v1 }
 0x8c4   : > { %2022 = vmatpush3.bf16.msra.mxu0 %v2426_v10 }
 0x8c5   : > { %2059 = vmatprep.subr.bf16.mxu0 %v2269_v1 }
 0x8c7   : > { %2024 = vmatmul.mubr.msk.bf16.vlgmr.msra.gmra.mrb[32].mxu0 %vm1724_vm2, %v2271_v14 }
 0x8c8   : > { %2060 = vmatpush3.bf16.msra.mxu0 %v2440_v19  ;;  %2061 = vmatprep.mubr.msk.bf16.mxu0 %vm2270_vm0, %v2269_v1 }
 0x8c9   : > { %2065 = vmatprep.subr.bf16.mxu0 %v2269_v1 }
 0x97a   : > { %v1137_v34 = vpop.f32.mrb[28].mxu0 }
 0x97b   : > { %v1138_v35 = vadd.f32 %v2539_v11, %v1137_v34  ;;  %v2005_v36 = vpop.f32.mrb[29].mxu0 }
 0x97c   : > { %v1140_v37 = vpop.f32.mrb[30].mxu0 }
 0x97d   : > { %v1143_v38 = vmax.f32 %v1138_v35, 0.0  ;;  %v2006_v39 = vpop.f32.mrb[31].mxu0 }
 0x97f   : > { %v1144_v40 = vmax.f32 %v1005_v13, %v1143_v38 }
 0x99a   : > { %v1186_v41 = vpop.f32.mrb[32].mxu0 }
 0x99b   : > { %v1192_v42 = vsub.f32 %v1186_v41, %v2452_v22  ;;  %v2025_v43 = vpop.f32.mrb[33].mxu0 }
 0x99c   : > { %v1189_v44 = vpop.f32.mrb[34].mxu0 }
 0x99d   : > { %v1193_v45 = vpack.c.bf16 %v1192_v42, %v1192_v42  ;;  %v2026_v46 = vpop.f32.mrb[35].mxu0 }
 0x99f   : > { %2030 = vmatmul.mubr.msk.bf16.vlgmr.msra.gmra.mrb[28].mxu1 %vm478_vm6, %v1193_v45 }
 0x9a0   : > { %2034 = vmatpush3.bf16.msra.mxu1 %v2458_v27  ;;  %2035 = vmatprep.mubr.msk.bf16.mxu1 %vm2270_vm0, %v2269_v1 }
 0x9a1   : > { %2039 = vmatprep.subr.bf16.mxu1 %v2269_v1 }
 0xa72   : > { %v1231_v47 = vpop.f32.mrb[28].mxu1 }
 0xa73   : > { %v1232_v48 = vadd.f32 %v2469_v31, %v1231_v47  ;;  %v2031_v49 = vpop.f32.mrb[29].mxu1 }
 0xa74   : > { %v1234_v50 = vpop.f32.mrb[30].mxu1 }
 0xa75   : > { %v1237_v51 = vmax.f32 %v1232_v48, 0.0  ;;  %v2032_v52 = vpop.f32.mrb[31].mxu1 }
 0xa77   : > { %v1238_v53 = vpack.c.bf16 %v1237_v51, %v1237_v51 }
 0xa79   : > { %2036 = vmatmul.mubr.msk.bf16.vlgmr.msra.gmra.mrb[32].mxu1 %vm543_vm7, %v1238_v53 }
 0xa7a   : > { %2040 = vmatpush3.bf16.msra.mxu1 %v2395_v3  ;;  %2055 = vmatprep.mubr.msk.bf16.mxu1 %vm2270_vm0, %v2269_v1 }
 0xa7b   : > { %2041 = vmatprep.subr.bf16.mxu1 %v2269_v1 }
 0xa7e   : > { %2042 = vmatpush3.bf16.msra.mxu1 %v2402_v4 }
 0xa7f   : > { %2043 = vmatprep.subr.bf16.mxu1 %v2269_v1 }
 0xa82   : > { %2044 = vmatpush3.bf16.msra.mxu1 %v2406_v5 }
 0xa83   : > { %2045 = vmatprep.subr.bf16.mxu1 %v2269_v1 }
 0xa86   : > { %2046 = vmatpush3.bf16.msra.mxu1 %v2410_v6 }
 0xa87   : > { %2047 = vmatprep.subr.bf16.mxu1 %v2269_v1 }
 0xa8a   : > { %2048 = vmatpush3.bf16.msra.mxu1 %v2414_v7 }
 0xa8b   : > { %2049 = vmatprep.subr.bf16.mxu1 %v2269_v1 }
 0xa8e   : > { %2050 = vmatpush3.bf16.msra.mxu1 %v2418_v8 }
 0xa8f   : > { %2051 = vmatprep.subr.bf16.mxu1 %v2269_v1 }
 0xa92   : > { %2052 = vmatpush3.bf16.msra.mxu1 %v2422_v9 }
 0xa93   : > { %2053 = vmatprep.subr.bf16.mxu1 %v2269_v1 }
 0xa96   : > { %2054 = vmatpush3.bf16.msra.mxu1 %v2426_v10 }
 0xa97   : > { %2091 = vmatprep.subr.bf16.mxu1 %v2269_v1 }
 0xa99   : > { %2056 = vmatmul.mubr.msk.bf16.vlgmr.msra.gmra.mrb[36].mxu1 %vm1729_vm4, %v2271_v14 }
 0xa9a   : > { %2092 = vmatpush3.bf16.msra.mxu1 %v2440_v19  ;;  %2093 = vmatprep.mubr.msk.bf16.mxu1 %vm2270_vm0, %v2269_v1 }
 0xa9b   : > { %2097 = vmatprep.subr.bf16.mxu1 %v2269_v1 }
 0xb4c   : > { %v1276_v56 = vpop.f32.mrb[32].mxu1 }
 0xb4d   : > { %v1277_v57 = vadd.f32 %v2539_v11, %v1276_v56  ;;  %v2037_v58 = vpop.f32.mrb[33].mxu1 }
 0xb4e   : > { %v1279_v59 = vpop.f32.mrb[34].mxu1 }
 0xb4f   : > { %v1282_v60 = vmax.f32 %v1277_v57, 0.0  ;;  %v2038_v61 = vpop.f32.mrb[35].mxu1 }
 0xb51   : > { %v1283_v62 = vmax.f32 %v1144_v40, %v1282_v60 }
 0xb6c   : > { %v1325_v63 = vpop.f32.mrb[36].mxu1 }
 0xb6d   : > { %v1331_v19 = vsub.f32 %v1325_v63, %v2452_v22  ;;  %v2057_v0 = vpop.f32.mrb[37].mxu1 }
 0xb6e   : > { %v1328_v13 = vpop.f32.mrb[38].mxu1 }
 0xb6f   : > { %v1332_v15 = vpack.c.bf16 %v1331_v19, %v1331_v19  ;;  %v2058_v16 = vpop.f32.mrb[39].mxu1 }
 0xb71   : > { %2062 = vmatmul.mubr.msk.bf16.vlgmr.msra.gmra.mrb[36].mxu0 %vm478_vm6, %v1332_v15 }
 0xb72   : > { %2066 = vmatpush3.bf16.msra.mxu0 %v2458_v27  ;;  %2067 = vmatprep.mubr.msk.bf16.mxu0 %vm2270_vm0, %v2269_v1 }
 0xb73   : > { %2071 = vmatprep.subr.bf16.mxu0 %v2269_v1 }
 0xc44   : > { %v1370_v2 = vpop.f32.mrb[36].mxu0 }
 0xc45   : > { %v1371_v17 = vadd.f32 %v2469_v31, %v1370_v2  ;;  %v2063_v18 = vpop.f32.mrb[37].mxu0 }
 0xc46   : > { %v1373_v20 = vpop.f32.mrb[38].mxu0 }
 0xc47   : > { %v1376_v21 = vmax.f32 %v1371_v17, 0.0  ;;  %v2064_v23 = vpop.f32.mrb[39].mxu0 }
 0xc49   : > { %v1377_v24 = vpack.c.bf16 %v1376_v21, %v1376_v21 }
 0xc4b   : > { %2068 = vmatmul.mubr.msk.bf16.vlgmr.msra.gmra.mrb[40].mxu0 %vm543_vm7, %v1377_v24 }
 0xc4c   : > { %2072 = vmatpush3.bf16.msra.mxu0 %v2395_v3  ;;  %2087 = vmatprep.mubr.msk.bf16.mxu0 %vm2270_vm0, %v2269_v1  ;;  %v1425_v3 = vpop.permute.xlu1 %1424 }
 0xc4d   : > { %2073 = vmatprep.subr.bf16.mxu0 %v2269_v1  ;;  %vm1426_vm5 = vcmp.eq.s32.totalorder %v2431_v12, %v1425_v3 }
 0xc4e   : > { %vm1734_vm8 = vmpackc.low %vm1426_vm5, %vm1426_vm5 }
 0xc50   : > { %2074 = vmatpush3.bf16.msra.mxu0 %v2402_v4 }
 0xc51   : > { %2075 = vmatprep.subr.bf16.mxu0 %v2269_v1 }
 0xc54   : > { %2076 = vmatpush3.bf16.msra.mxu0 %v2406_v5 }
 0xc55   : > { %2077 = vmatprep.subr.bf16.mxu0 %v2269_v1 }
 0xc58   : > { %2078 = vmatpush3.bf16.msra.mxu0 %v2410_v6 }
 0xc59   : > { %2079 = vmatprep.subr.bf16.mxu0 %v2269_v1 }
 0xc5c   : > { %2080 = vmatpush3.bf16.msra.mxu0 %v2414_v7 }
 0xc5d   : > { %2081 = vmatprep.subr.bf16.mxu0 %v2269_v1 }
 0xc60   : > { %2082 = vmatpush3.bf16.msra.mxu0 %v2418_v8 }
 0xc61   : > { %2083 = vmatprep.subr.bf16.mxu0 %v2269_v1 }
 0xc64   : > { %2084 = vmatpush3.bf16.msra.mxu0 %v2422_v9 }
 0xc65   : > { %2085 = vmatprep.subr.bf16.mxu0 %v2269_v1 }
 0xc68   : > { %2086 = vmatpush3.bf16.msra.mxu0 %v2426_v10 }
 0xc6b   : > { %2088 = vmatmul.mubr.msk.bf16.vlgmr.msra.gmra.mrb[44].mxu0 %vm1734_vm8, %v2271_v14 }
 0xd1e   : > { %v1415_v4 = vpop.f32.mrb[40].mxu0 }
 0xd1f   : > { %v1416_v5 = vadd.f32 %v2539_v11, %v1415_v4  ;;  %v2069_v6 = vpop.f32.mrb[41].mxu0 }
 0xd20   : > { %v1418_v7 = vpop.f32.mrb[42].mxu0 }
 0xd21   : > { %v1421_v8 = vmax.f32 %v1416_v5, 0.0  ;;  %v2070_v25 = vpop.f32.mrb[43].mxu0 }
 0xd23   : > { %v1422_v26 = vmax.f32 %v1283_v62, %v1421_v8 }
 0xd3e   : > { %v1464_v28 = vpop.f32.mrb[44].mxu0 }
 0xd3f   : > { %v1470_v9 = vsub.f32 %v1464_v28, %v2452_v22  ;;  %v2089_v29 = vpop.f32.mrb[45].mxu0 }
 0xd40   : > { %v1467_v30 = vpop.f32.mrb[46].mxu0 }
 0xd41   : > { %v1471_v12 = vpack.c.bf16 %v1470_v9, %v1470_v9  ;;  %v2090_v32 = vpop.f32.mrb[47].mxu0 }
 0xd43   : > { %2094 = vmatmul.mubr.msk.bf16.vlgmr.msra.gmra.mrb[40].mxu1 %vm478_vm6, %v1471_v12 }
 0xd44   : > { %2098 = vmatpush3.bf16.msra.mxu1 %v2458_v27  ;;  %2099 = vmatprep.mubr.msk.bf16.mxu1 %vm2270_vm0, %v2269_v1  ;;  %vm1562_vm0 = vcmask 261120  }
 0xe16   : > { %v1509_v10 = vpop.f32.mrb[40].mxu1 }
 0xe17   : > { %v1510_v14 = vadd.f32 %v2469_v31, %v1509_v10  ;;  %v2095_v33 = vpop.f32.mrb[41].mxu1 }
 0xe18   : > { %v1512_v34 = vpop.f32.mrb[42].mxu1 }
 0xe19   : > { %v1515_v35 = vmax.f32 %v1510_v14, 0.0  ;;  %v2096_v22 = vpop.f32.mrb[43].mxu1 }
 0xe1b   : > { %v1516_v36 = vpack.c.bf16 %v1515_v35, %v1515_v35 }
 0xe1d   : > { %2100 = vmatmul.mubr.msk.bf16.vlgmr.msra.gmra.mrb[44].mxu1 %vm543_vm7, %v1516_v36 }
 0xef0   : > { %v1554_v37 = vpop.f32.mrb[44].mxu1 }
 0xef1   : > { %v1555_v38 = vadd.f32 %v2539_v11, %v1554_v37  ;;  %v2101_v27 = vpop.f32.mrb[45].mxu1 }
 0xef2   : > { %v1557_v39 = vpop.f32.mrb[46].mxu1 }
 0xef3   : > { %v1560_v1 = vmax.f32 %v1555_v38, 0.0  ;;  %v2102_v31 = vpop.f32.mrb[47].mxu1 }
 0xef5   : > { %v1561_v40 = vmax.f32 %v1422_v26, %v1560_v1 }
 0xef7   : > { %1563 = vst.msk [vmem:[%s327_s8] sm:$0xff] %vm1562_vm0, %v1561_v40 }
 0xef8   : > { %2201 = shalt.err (!%p2198_p5)
}
 0xef9   : > { %s2202_s21 = scalar_lea.hbm %s2714_s18, 128  ;;  %s2206_s30 = scalar_lea.hbm %s2768_s7, 256 }
 0xefa   : > { %p2203_p6 = scmp.ne.s32.totalorder %s2714_s18, %s2202_s21  ;;  %p2207_p10 = scmp.lt.u32.totalorder %s2714_s18, %s2768_s7 }
 0xefb   : > { %p2208_p11 = scmp.lt.u32.totalorder %s2206_s30, %s2202_s21  ;;  %p2210_p13 = scmp.lt.u32.totalorder %s2202_s21, %s2714_s18 }
 0xefc   : > { %p2204_p7 = pnand %p2203_p6, %p2361_p4 }
 0xefd   : > { %p2209_p12 = por %p2208_p11, %p2207_p10 }
 0xefe   : > { %p2205_p9 = pneg %p2204_p7 }
 0xeff   : > { %p2211_p0 = por %p2210_p13, %p2209_p12 }
 0xf01   : > { %p2212_p1 = pnand %p2211_p0, %p2205_p9 }
 0xf03   : > { %2215 = shalt.err (!%p2212_p1)
}
 0xf04   : > { %2103 = dma.vmem_to_hbm [thread:$0]  (%p2361_p4), %s2716_s10, 128, %s2714_s18, %s1565_s19  }
 0xf05 PF: > { %p2109_p2 = scmp.ge.s32.totalorder %s2266_s29, 2  ;;  %s1591_s17 = sand.u32 1, %s2246_s24  }
 0xf06   : > { %s1592_s15 = scalar_lea.sflag [#allocation3], %s1591_s17 }
 0xf07   : > { %p2106_p3 = pnand %p2109_p2, %p2368_p8 }
 0xf09   : > { %2241 = dma.done.wait (!%p2106_p3), %s1592_s15, 128  }
 0xf0a   : > { %2243 = vsyncadd (!%p2106_p3), %s1592_s15, 4294967168  ;;  %s20_s29 = sadd.s32 1, %s2266_s29   ;;  %s2771_s24 = smov %s2250_s25 }
 0xf0b   : > { %p17_p5 = scmp.ge.s32.totalorder %s20_s29, 4   ;;  %s2772_s25 = smov %s2254_s26 }
 0xf0c   : > { %s2773_s26 = smov %s2374_s14  ;;  %s2774_s27 = smov %s2262_s28 }
 0xf0d   : > { %s2775_s28 = smov %s2777_s9  ;;  %19 = sbr.rel (!%p17_p5) target bundleno = 4 (0x4), region = 89 }
 0xf14   :  { %1597 = vsyncpa [#allocation3], 1 }
 0xf15   :  { %1599 = vsyncpa [#allocation3 + $0x1], 1 }

</bundles_post_ra>
